<compile_context>
chip_gen: v7x
topology: tpu7x:2x2x1
jax: 0.10.0
libtpu: 0.0.40
codegen_flags: <defaults>
</compile_context>

<pallas_src>
import jax
import jax.numpy as jnp
from jax.experimental import pallas as pl
from jax.experimental.pallas import tpu as pltpu

BN_EPS = 1e-5
NEG_SLOPE = 0.01          # F.leaky_relu default
HEAD_PAD = 8              # fc3 head padded 1 -> 8 lanes (block == full array dim -> legal)


def _leaky_relu(x):
    return jnp.maximum(x, NEG_SLOPE * x)


def _pick_block_b(batch, min_steps=2):
    """Largest batch tile dividing `batch` that still leaves >= min_steps grid
    steps, so v7x's two TensorCores both get work and DMA overlaps compute."""
    for tb in (4096, 2048, 1024, 512, 256, 128, 64, 32, 16, 8):
        if batch % tb == 0 and batch // tb >= min_steps:
            return tb
    return batch  # small / odd batch: single full-extent block


# -----------------------------------------------------------------------------
# Fused MLP kernel: fc1(+folded BN) / leaky, split fc2 / leaky, padded fc3 head.
# Tiled over the batch; all weights use constant index_maps and stay VMEM-resident.
# -----------------------------------------------------------------------------
def critic_mlp_kernel(x_ref, a_ref,
                      w1_ref, b1_ref, w2x_ref, w2a_ref, b2_ref,
                      w3_ref, b3_ref, out_ref):
    # fc1 (BN already folded into w1/b1) + leaky_relu.
    h1 = jnp.dot(x_ref[...].astype(jnp.bfloat16), w1_ref[...],
                 preferred_element_type=jnp.float32) + b1_ref[...]
    h1 = _leaky_relu(h1)

    # fc2 on cat(xs, action) == xs @ W2x + action @ W2a, then leaky_relu.
    h2 = (jnp.dot(h1.astype(jnp.bfloat16), w2x_ref[...],
                  preferred_element_type=jnp.float32)
          + jnp.dot(a_ref[...].astype(jnp.bfloat16), w2a_ref[...],
                    preferred_element_type=jnp.float32)
          + b2_ref[...])
    h2 = _leaky_relu(h2)

    # fc3 (1-wide head padded to 8 lanes; wrapper slices the real column back out).
    q = jnp.dot(h2.astype(jnp.bfloat16), w3_ref[...],
                preferred_element_type=jnp.float32) + b3_ref[...]
    out_ref[...] = q.astype(out_ref.dtype)


def critic_forward(state, action, params, *, block_b=None):
    """Critic forward: state (B, S) f32, action (B, A) f32 -> Q (B, 1) f32."""
    gamma, beta, w1, b1, w2x, w2a, b2, w3, b3 = params
    B, S = state.shape
    A = action.shape[1]
    F1 = w1.shape[1]
    F2 = w2x.shape[1]

    # --- BN batch statistics (training mode, biased variance) done in plain jnp:
    # a (B, S) reduction XLA handles trivially; centered variance avoids the
    # E[x^2]-E[x]^2 cancellation issue.  Fold scale/shift into fc1 in f32, then
    # cast the folded weight to bf16 exactly once.
    sf32 = state.astype(jnp.float32)
    mean = jnp.mean(sf32, axis=0, keepdims=True)                     # (1, S)
    var = jnp.mean(jnp.square(sf32 - mean), axis=0, keepdims=True)   # (1, S) biased
    scale = gamma * jax.lax.rsqrt(var + BN_EPS)                      # (1, S)
    shift = beta - mean * scale                                      # (1, S)
    w1_folded = (w1 * scale.T).astype(jnp.bfloat16)                  # (S, F1)
    b1_folded = b1 + shift @ w1                                      # (1, F1) f32

    tb = block_b or _pick_block_b(B)
    if B % tb != 0:
        tb = B
    grid = (B // tb,)

    out_padded = pl.pallas_call(
        critic_mlp_kernel,
        out_shape=jax.ShapeDtypeStruct((B, HEAD_PAD), jnp.float32),
        grid=grid,
        in_specs=[
            pl.BlockSpec((tb, S), lambda i: (i, 0)),         # state tile (f32)
            pl.BlockSpec((tb, A), lambda i: (i, 0)),         # action tile (f32, no padding)
            pl.BlockSpec((S, F1), lambda i: (0, 0)),         # W1 folded (bf16)
            pl.BlockSpec((1, F1), lambda i: (0, 0)),         # b1 folded (f32)
            pl.BlockSpec((F1, F2), lambda i: (0, 0)),        # W2 state rows (bf16)
            pl.BlockSpec((A, F2), lambda i: (0, 0)),         # W2 action rows (bf16)
            pl.BlockSpec((1, F2), lambda i: (0, 0)),         # b2 (f32)
            pl.BlockSpec((F2, HEAD_PAD), lambda i: (0, 0)),  # W3 (bf16, 8-lane head)
            pl.BlockSpec((1, HEAD_PAD), lambda i: (0, 0)),   # b3 (f32, 8-lane head)
        ],
        out_specs=pl.BlockSpec((tb, HEAD_PAD), lambda i: (i, 0)),
        compiler_params=pltpu.CompilerParams(
            dimension_semantics=("parallel",)),
    )(state, action, w1_folded, b1_folded, w2x, w2a, b2, w3, b3)

    return out_padded[:, :1]


def init_params(key, state_size, action_size, fc1_units=128, fc2_units=256):
    """Deterministic init mimicking the PyTorch module's init ranges."""
    ks = jax.random.split(key, 7)

    def uniform(k, shape, lim):
        return jax.random.uniform(k, shape, jnp.float32, -lim, lim)

    # hidden_init uses fan = weight.size(0) = out_features in the reference.
    w1 = uniform(ks[0], (state_size, fc1_units), fc1_units ** -0.5)
    b1 = uniform(ks[1], (1, fc1_units), state_size ** -0.5)
    w2x = uniform(ks[2], (fc1_units, fc2_units), fc2_units ** -0.5)
    w2a = uniform(ks[3], (action_size, fc2_units), fc2_units ** -0.5)
    b2 = uniform(ks[4], (1, fc2_units), (fc1_units + action_size) ** -0.5)
    w3_raw = uniform(ks[5], (fc2_units, 1), 0.003)
    b3_raw = uniform(ks[6], (1, 1), fc2_units ** -0.5)

    # BatchNorm1d affine params (default init: gamma=1, beta=0).
    gamma = jnp.ones((1, state_size), jnp.float32)
    beta = jnp.zeros((1, state_size), jnp.float32)

    # fc3 head padded 1 -> 8 lanes with zeros (keeps the math exact).
    w3 = jnp.zeros((fc2_units, HEAD_PAD), jnp.float32).at[:, :1].set(w3_raw)
    b3 = jnp.zeros((1, HEAD_PAD), jnp.float32).at[:, :1].set(b3_raw)

    bf16 = lambda a: a.astype(jnp.bfloat16)
    # W1 stays f32 so the BN fold happens in f32 (cast to bf16 once per call);
    # the other matmul weights are stored bf16.
    return (gamma, beta, w1, b1, bf16(w2x), bf16(w2a), b2, bf16(w3), b3)


def critic_reference(state, action, params):
    """Pure-JAX f32 reference of the PyTorch forward (training-mode BN)."""
    gamma, beta, w1, b1, w2x, w2a, b2, w3, b3 = params
    f32 = lambda a: a.astype(jnp.float32)

    mean = jnp.mean(state, axis=0, keepdims=True)
    var = jnp.mean((state - mean) ** 2, axis=0, keepdims=True)   # biased (train mode)
    xn = (state - mean) * jax.lax.rsqrt(var + BN_EPS) * gamma + beta

    h1 = _leaky_relu(xn @ w1 + b1)
    h2 = _leaky_relu(h1 @ f32(w2x) + action @ f32(w2a) + b2)
    out = h2 @ f32(w3) + b3
    return out[:, :1]


if __name__ == "__main__":
    # Small shapes consistent with the module: state_size=32, action_size=4.
    B, STATE_SIZE, ACTION_SIZE = 16, 32, 4

    key = jax.random.PRNGKey(0)
    k_state, k_action, k_params = jax.random.split(key, 3)
    state = jax.random.normal(k_state, (B, STATE_SIZE), jnp.float32)
    action = jax.random.uniform(k_action, (B, ACTION_SIZE), jnp.float32, -1.0, 1.0)
    params = init_params(k_params, STATE_SIZE, ACTION_SIZE)

    out = jax.block_until_ready(jax.jit(critic_forward)(state, action, params))
    ref = critic_reference(state, action, params)

    assert out.shape == (B, 1)
    err = jnp.max(jnp.abs(out - ref))
    assert jnp.allclose(out, ref, atol=3e-3, rtol=3e-2), \
        f"mismatch vs reference (max abs err={err})"

    print("KERNEL_OK")
</pallas_src>

<mosaic_0001>
module attributes {stable_mosaic.version = 11 : i64} {
  func.func @critic_mlp_kernel(%arg0: i32, %arg1: memref<8x32xf32, #tpu.memory_space<vmem>>, %arg2: memref<8x4xf32, #tpu.memory_space<vmem>>, %arg3: memref<32x128xbf16, #tpu.memory_space<vmem>>, %arg4: memref<1x128xf32, #tpu.memory_space<vmem>>, %arg5: memref<128x256xbf16, #tpu.memory_space<vmem>>, %arg6: memref<4x256xbf16, #tpu.memory_space<vmem>>, %arg7: memref<1x256xf32, #tpu.memory_space<vmem>>, %arg8: memref<256x8xbf16, #tpu.memory_space<vmem>>, %arg9: memref<1x8xf32, #tpu.memory_space<vmem>>, %arg10: memref<8x8xf32, #tpu.memory_space<vmem>>) attributes {dimension_semantics = [#tpu.dimension_semantics<parallel>], iteration_bounds = array<i64: 2>, scalar_prefetch = 0 : i64, scratch_operands = 0 : i64, tpu.core_type = #tpu.core_type<tc>, window_params = [{transform_indices = @transform_0, window_bounds = array<i64: 8, 32>}, {transform_indices = @transform_1, window_bounds = array<i64: 8, 4>}, {pipeline_mode = #tpu.pipeline_mode<synchronous>, transform_indices = @transform_2, window_bounds = array<i64: 32, 128>}, {pipeline_mode = #tpu.pipeline_mode<synchronous>, transform_indices = @transform_3, window_bounds = array<i64: 1, 128>}, {pipeline_mode = #tpu.pipeline_mode<synchronous>, transform_indices = @transform_4, window_bounds = array<i64: 128, 256>}, {pipeline_mode = #tpu.pipeline_mode<synchronous>, transform_indices = @transform_5, window_bounds = array<i64: 4, 256>}, {pipeline_mode = #tpu.pipeline_mode<synchronous>, transform_indices = @transform_6, window_bounds = array<i64: 1, 256>}, {pipeline_mode = #tpu.pipeline_mode<synchronous>, transform_indices = @transform_7, window_bounds = array<i64: 256, 8>}, {pipeline_mode = #tpu.pipeline_mode<synchronous>, transform_indices = @transform_8, window_bounds = array<i64: 1, 8>}, {transform_indices = @transform_9, window_bounds = array<i64: 8, 8>}]} {
    %c0 = arith.constant 0 : index
    %c0_0 = arith.constant 0 : index
    %0 = vector.load %arg1[%c0, %c0_0] : memref<8x32xf32, #tpu.memory_space<vmem>>, vector<8x32xf32>
    %1 = arith.truncf %0 : vector<8x32xf32> to vector<8x32xbf16>
    %c0_1 = arith.constant 0 : index
    %c0_2 = arith.constant 0 : index
    %2 = vector.load %arg3[%c0_1, %c0_2] : memref<32x128xbf16, #tpu.memory_space<vmem>>, vector<32x128xbf16>
    %cst = arith.constant dense<0.000000e+00> : vector<8x128xf32>
    %3 = tpu.matmul %1, %2, %cst {dimension_numbers = #tpu.dot_dimension_numbers<[1], [0], [0], [1], [0, 0, 1, 1], [], []>} : vector<8x32xbf16>, vector<32x128xbf16>, vector<8x128xf32> -> vector<8x128xf32>
    %c0_3 = arith.constant 0 : index
    %c0_4 = arith.constant 0 : index
    %4 = vector.load %arg4[%c0_3, %c0_4] : memref<1x128xf32, #tpu.memory_space<vmem>>, vector<1x128xf32>
    %5 = vector.broadcast %4 : vector<1x128xf32> to vector<8x128xf32>
    %6 = arith.addf %3, %5 : vector<8x128xf32>
    %cst_5 = arith.constant 0.00999999977 : f32
    %7 = vector.broadcast %cst_5 : f32 to vector<8x128xf32>
    %8 = arith.mulf %7, %6 : vector<8x128xf32>
    %9 = arith.maximumf %6, %8 : vector<8x128xf32>
    %10 = arith.truncf %9 : vector<8x128xf32> to vector<8x128xbf16>
    %c0_6 = arith.constant 0 : index
    %c0_7 = arith.constant 0 : index
    %11 = vector.load %arg5[%c0_6, %c0_7] : memref<128x256xbf16, #tpu.memory_space<vmem>>, vector<128x256xbf16>
    %cst_8 = arith.constant dense<0.000000e+00> : vector<8x256xf32>
    %12 = tpu.matmul %10, %11, %cst_8 {dimension_numbers = #tpu.dot_dimension_numbers<[1], [0], [0], [1], [0, 0, 1, 1], [], []>} : vector<8x128xbf16>, vector<128x256xbf16>, vector<8x256xf32> -> vector<8x256xf32>
    %c0_9 = arith.constant 0 : index
    %c0_10 = arith.constant 0 : index
    %13 = vector.load %arg2[%c0_9, %c0_10] : memref<8x4xf32, #tpu.memory_space<vmem>>, vector<8x4xf32>
    %14 = arith.truncf %13 : vector<8x4xf32> to vector<8x4xbf16>
    %c0_11 = arith.constant 0 : index
    %c0_12 = arith.constant 0 : index
    %15 = vector.load %arg6[%c0_11, %c0_12] : memref<4x256xbf16, #tpu.memory_space<vmem>>, vector<4x256xbf16>
    %cst_13 = arith.constant dense<0.000000e+00> : vector<8x256xf32>
    %16 = tpu.matmul %14, %15, %cst_13 {dimension_numbers = #tpu.dot_dimension_numbers<[1], [0], [0], [1], [0, 0, 1, 1], [], []>} : vector<8x4xbf16>, vector<4x256xbf16>, vector<8x256xf32> -> vector<8x256xf32>
    %17 = arith.addf %12, %16 : vector<8x256xf32>
    %c0_14 = arith.constant 0 : index
    %c0_15 = arith.constant 0 : index
    %18 = vector.load %arg7[%c0_14, %c0_15] : memref<1x256xf32, #tpu.memory_space<vmem>>, vector<1x256xf32>
    %19 = vector.broadcast %18 : vector<1x256xf32> to vector<8x256xf32>
    %20 = arith.addf %17, %19 : vector<8x256xf32>
    %cst_16 = arith.constant 0.00999999977 : f32
    %21 = vector.broadcast %cst_16 : f32 to vector<8x256xf32>
    %22 = arith.mulf %21, %20 : vector<8x256xf32>
    %23 = arith.maximumf %20, %22 : vector<8x256xf32>
    %24 = arith.truncf %23 : vector<8x256xf32> to vector<8x256xbf16>
    %c0_17 = arith.constant 0 : index
    %c0_18 = arith.constant 0 : index
    %25 = vector.load %arg8[%c0_17, %c0_18] : memref<256x8xbf16, #tpu.memory_space<vmem>>, vector<256x8xbf16>
    %cst_19 = arith.constant dense<0.000000e+00> : vector<8x8xf32>
    %26 = tpu.matmul %24, %25, %cst_19 {dimension_numbers = #tpu.dot_dimension_numbers<[1], [0], [0], [1], [0, 0, 1, 1], [], []>} : vector<8x256xbf16>, vector<256x8xbf16>, vector<8x8xf32> -> vector<8x8xf32>
    %c0_20 = arith.constant 0 : index
    %c0_21 = arith.constant 0 : index
    %27 = vector.load %arg9[%c0_20, %c0_21] : memref<1x8xf32, #tpu.memory_space<vmem>>, vector<1x8xf32>
    %28 = vector.broadcast %27 : vector<1x8xf32> to vector<8x8xf32>
    %29 = arith.addf %26, %28 : vector<8x8xf32>
    %c0_22 = arith.constant 0 : index
    %c0_23 = arith.constant 0 : index
    %30 = vector.load %arg10[%c0_22, %c0_23] : memref<8x8xf32, #tpu.memory_space<vmem>>, vector<8x8xf32>
    tpu.vector_store %arg10[%c0_22, %c0_23], %29 {strides = array<i32>} : memref<8x8xf32, #tpu.memory_space<vmem>>, vector<8x8xf32>,
    return
  }
  func.func @transform_0(%arg0: i32) -> (i32, i32) {
    %c0_i32 = arith.constant 0 : i32
    %c0_i32_0 = arith.constant 0 : i32
    return %arg0, %c0_i32 : i32, i32
  }
  func.func @transform_1(%arg0: i32) -> (i32, i32) {
    %c0_i32 = arith.constant 0 : i32
    %c0_i32_0 = arith.constant 0 : i32
    return %arg0, %c0_i32 : i32, i32
  }
  func.func @transform_2(%arg0: i32) -> (i32, i32) {
    %c0_i32 = arith.constant 0 : i32
    %c0_i32_0 = arith.constant 0 : i32
    %c0_i32_1 = arith.constant 0 : i32
    return %c0_i32, %c0_i32_0 : i32, i32
  }
  func.func @transform_3(%arg0: i32) -> (i32, i32) {
    %c0_i32 = arith.constant 0 : i32
    %c0_i32_0 = arith.constant 0 : i32
    %c0_i32_1 = arith.constant 0 : i32
    return %c0_i32, %c0_i32_0 : i32, i32
  }
  func.func @transform_4(%arg0: i32) -> (i32, i32) {
    %c0_i32 = arith.constant 0 : i32
    %c0_i32_0 = arith.constant 0 : i32
    %c0_i32_1 = arith.constant 0 : i32
    return %c0_i32, %c0_i32_0 : i32, i32
  }
  func.func @transform_5(%arg0: i32) -> (i32, i32) {
    %c0_i32 = arith.constant 0 : i32
    %c0_i32_0 = arith.constant 0 : i32
    %c0_i32_1 = arith.constant 0 : i32
    return %c0_i32, %c0_i32_0 : i32, i32
  }
  func.func @transform_6(%arg0: i32) -> (i32, i32) {
    %c0_i32 = arith.constant 0 : i32
    %c0_i32_0 = arith.constant 0 : i32
    %c0_i32_1 = arith.constant 0 : i32
    return %c0_i32, %c0_i32_0 : i32, i32
  }
  func.func @transform_7(%arg0: i32) -> (i32, i32) {
    %c0_i32 = arith.constant 0 : i32
    %c0_i32_0 = arith.constant 0 : i32
    %c0_i32_1 = arith.constant 0 : i32
    return %c0_i32, %c0_i32_0 : i32, i32
  }
  func.func @transform_8(%arg0: i32) -> (i32, i32) {
    %c0_i32 = arith.constant 0 : i32
    %c0_i32_0 = arith.constant 0 : i32
    %c0_i32_1 = arith.constant 0 : i32
    return %c0_i32, %c0_i32_0 : i32, i32
  }
  func.func @transform_9(%arg0: i32) -> (i32, i32) {
    %c0_i32 = arith.constant 0 : i32
    %c0_i32_0 = arith.constant 0 : i32
    return %arg0, %c0_i32 : i32, i32
  }
}

</mosaic_0001>

<bundles_post_ra>
// kernel: critic_forward.1
= control target key start
LH: loop header
LB: loop body
LE: loop exit
PB: predicated region body
PF: predicated region fallthrough
CT: control target
= control target key end

     0   :  { %s1078_s30 = smov 0   ;;  %s1217_s0 = inlined_call_operand.vmem [shape: f32[16,32], index: 0, kind: input, shape index: {}]   ;;  %s1218_s1 = inlined_call_operand.vmem [shape: f32[16,4], index: 1, kind: input, shape index: {}]   ;;  %s1219_s2 = inlined_call_operand.vmem [shape: bf16[32,128], index: 2, kind: input, shape index: {}]   ;;  %s1220_s3 = inlined_call_operand.vmem [shape: f32[1,128], index: 3, kind: input, shape index: {}]   ;;  %s1221_s4 = inlined_call_operand.vmem [shape: bf16[128,256], index: 4, kind: input, shape index: {}]   ;;  %s1222_s5 = inlined_call_operand.vmem [shape: bf16[4,256], index: 5, kind: input, shape index: {}]   ;;  %s1223_s6 = inlined_call_operand.vmem [shape: f32[1,256], index: 6, kind: input, shape index: {}]   ;;  %s1224_s7 = inlined_call_operand.vmem [shape: bf16[256,8], index: 7, kind: input, shape index: {}]   ;;  %s1225_s8 = inlined_call_operand.vmem [shape: f32[1,8], index: 8, kind: input, shape index: {}]   ;;  %s1226_s9 = inlined_call_operand.vmem [shape: f32[16,8], index: 9, kind: output, shape index: {}]  }
   0x1 LB: > { %s881_s10 = sadd.s32 4294967295, %s1023_s30   ;;  %p885_p0 = scmp.ge.s32.totalorder %s1023_s30, 1  ;;  %s1023_s30 = sphi %s1078_s30, %s19_s30  }
   0x2   : > { %p295_p1 = scmp.lt.s32.totalorder %s1023_s30, 3 }
   0x4   : > { %p296_p2 = pnand %p885_p0, %p295_p1 }
   0x5   : > { %v975_v0 = vld [vmem:[%s1219_s2] sm:$0xff] (!%p296_p2)   ;;  %v1025_v1 = vmov (!%p296_p2), 0.0   ;;  %v976_v2 = vld [vmem:[%s1219_s2 + $0x8] sm:$0xff] (!%p296_p2)   ;;  %vm1026_vm0 = vmmov (!%p296_p2), 0   ;;  %p333_p3 = scmp.lt.s32.totalorder (!%p296_p2), %s881_s10, 1  ;;  %vm450_vm1 = vcmask (!%p296_p2), 1041408   ;;  %v621_v56 = vlaneseq (!%p296_p2) }
   0x6   : > { %299 = sbr.rel (%p296_p2) target bundleno = 681 (0x2a9), region = 56  ;;  %956 = vmatprep.subr.bf16.mxu0 (!%p296_p2), %v1025_v1  ;;  %960 = vmatprep.mubr.msk.bf16.mxu0 (!%p296_p2), %vm1026_vm0, %v1025_v1  ;;  %v893_v3 = vld.sshfl [vmem:[%s1222_s5] sm:$0x33 pattern:$0x76325410] (!%p296_p2)  ;;  %v1027_v6 = vmov (!%p296_p2), 0  }
   0x7   : > { %957 = vmatpush3.bf16.msra.mxu0 (!%p296_p2), %v975_v0  ;;  %v445_v4 = vcombine.high (!%p296_p2), %v893_v3, %v893_v3  ;;  %v452_v5 = vsel (!%p296_p2), %vm450_vm1, %v893_v3, 0  ;;  %489 = vmatprep.mubr.bf16.mxu1 (!%p296_p2), %v1027_v6  ;;  %v979_v7 = vld [vmem:[%s1221_s4 + $0x4] ss:$8 sps:$4 sm:$0xff] (!%p296_p2)   ;;  %vm371_vm2 = vcmask (!%p296_p2), 261120   ;;  %vm446_vm3 = vcmask (!%p296_p2), 31744   ;;  %v1005_v31 = vld [vmem:[%s1224_s7 + $0x50] sm:$0xff] (!%p296_p2)  }
   0x8   : > { %958 = vmatprep.subr.bf16.mxu0 (!%p296_p2), %v1025_v1  ;;  %v977_v10 = vld [vmem:[%s1221_s4] ss:$8 sps:$4 sm:$0xff] (!%p296_p2)   ;;  %v982_v13 = vld [vmem:[%s1221_s4 + $0x14] ss:$8 sps:$4 sm:$0xff] (!%p296_p2)   ;;  %v980_v14 = vld [vmem:[%s1221_s4 + $0x10] ss:$8 sps:$4 sm:$0xff] (!%p296_p2)  }
   0x9   : > { %894 = vmatprep.subr.msk.bf16.mxu1 (!%p296_p2), %vm450_vm1, %v445_v4  ;;  %v985_v15 = vld [vmem:[%s1221_s4 + $0x24] ss:$8 sps:$4 sm:$0xff] (!%p296_p2)   ;;  %v983_v16 = vld [vmem:[%s1221_s4 + $0x20] ss:$8 sps:$4 sm:$0xff] (!%p296_p2)   ;;  %v988_v17 = vld [vmem:[%s1221_s4 + $0x34] ss:$8 sps:$4 sm:$0xff] (!%p296_p2)  }
   0xa   : > { %458 = vmatpush1.bf16.msra.mxu1 (!%p296_p2), %v452_v5  ;;  %v986_v18 = vld [vmem:[%s1221_s4 + $0x30] ss:$8 sps:$4 sm:$0xff] (!%p296_p2)   ;;  %v991_v19 = vld [vmem:[%s1221_s4 + $0x44] ss:$8 sps:$4 sm:$0xff] (!%p296_p2)   ;;  %v989_v20 = vld [vmem:[%s1221_s4 + $0x40] ss:$8 sps:$4 sm:$0xff] (!%p296_p2)  }
   0xb   : > { %959 = vmatpush3.bf16.msra.mxu0 (!%p296_p2), %v976_v2  ;;  %578 = vmatprep.subr.bf16.mxu1 (!%p296_p2), %v979_v7  ;;  %v994_v21 = vld [vmem:[%s1221_s4 + $0x54] ss:$8 sps:$4 sm:$0xff] (!%p296_p2)   ;;  %v992_v22 = vld [vmem:[%s1221_s4 + $0x50] ss:$8 sps:$4 sm:$0xff] (!%p296_p2)   ;;  %v997_v23 = vld [vmem:[%s1221_s4 + $0x64] ss:$8 sps:$4 sm:$0xff] (!%p296_p2)  }
   0xc   : > { %v995_v24 = vld [vmem:[%s1221_s4 + $0x60] ss:$8 sps:$4 sm:$0xff] (!%p296_p2)   ;;  %v1000_v25 = vld [vmem:[%s1221_s4 + $0x74] ss:$8 sps:$4 sm:$0xff] (!%p296_p2)   ;;  %v998_v26 = vld [vmem:[%s1221_s4 + $0x70] ss:$8 sps:$4 sm:$0xff] (!%p296_p2)  }
   0xd   : > { %s1228_s10 = smov (!%p333_p3, %s881_s10), 1  ;;  %v1001_v27 = vld [vmem:[%s1224_s7 + $0x40] sm:$0xff]   ;;  %v1003_v29 = vld [vmem:[%s1224_s7 + $0x48] sm:$0xff]   ;;  %v1006_v32 = vld [vmem:[%s1224_s7 + $0x10] sm:$0xff]   ;;  %v622_v57 = vshrl.u32 %v621_v56, 7  ;;  %vm814_vm4 = vcmask 64512  }
   0xe   : > { %s1098_s19 = sshll.u32 %s1228_s10, 3  ;;  %v1002_v28 = vld [vmem:[%s1224_s7] sm:$0xff]   ;;  %934 = vmatprep.subr.bf16.mxu0 %v1001_v27  ;;  %v1004_v30 = vld [vmem:[%s1224_s7 + $0x8] sm:$0xff]   ;;  %v1007_v33 = vld [vmem:[%s1224_s7 + $0x58] sm:$0xff]  }
   0xf   : > { %s336_s22 = scalar_lea.vmem %s1217_s0, %s1098_s19  ;;  %s340_s25 = scalar_lea.vmem %s1218_s1, %s1098_s19  ;;  %v1008_v34 = vld [vmem:[%s1224_s7 + $0x18] sm:$0xff]   ;;  %v1009_v35 = vld [vmem:[%s1224_s7 + $0x60] sm:$0xff]   ;;  %v1011_v50 = vld [vmem:[%s1224_s7 + $0x68] sm:$0xff]   ;;  %v623_v58 = vsub.s32 0, %v622_v57  ;;  %v627_v60 = vsub.s32 1, %v622_v57 }
  0x10   : > { %v346_v8 = vld [vmem:[%s336_s22] sm:$0xff]  ;;  %v1012_v51 = vld [vmem:[%s1224_s7 + $0x28] sm:$0xff]   ;;  %v1013_v52 = vld [vmem:[%s1224_s7 + $0x70] sm:$0xff]   ;;  %s344_s20 = scalar_lea.vmem %s1226_s9, %s1098_s19 }
  0x11   : > { %v434_v9 = vld [vmem:[%s340_s25] sm:$0xff]  ;;  %v347_v11 = vpack.c.bf16 %v346_v8, %v346_v8  ;;  %v1014_v53 = vld [vmem:[%s1224_s7 + $0x30] sm:$0xff]   ;;  %v1015_v54 = vld [vmem:[%s1224_s7 + $0x78] sm:$0xff]  }
  0x12   : > { %v435_v12 = vpack.c.bf16 %v434_v9, %v434_v9  ;;  %v1010_v36 = vld [vmem:[%s1224_s7 + $0x20] sm:$0xff]   ;;  %v1016_v55 = vld [vmem:[%s1224_s7 + $0x38] sm:$0xff]  }
  0x13   : > { %961 = vmatmul.mubr.msk.bf16.vlgmr.msra.gmra.mrb[0].mxu0 %vm371_vm2, %v347_v11  ;;  %v889_v37 = vld [vmem:[%s1220_s3] ss:$0 sm:$0xff] }
  0x14   : > { %895 = vmatmul.mubr.msk.bf16.vlgmr.msra.gmra.mrb[0].mxu1 %vm446_vm3, %v435_v12  ;;  %935 = vmatpush3.bf16.msra.mxu0 %v1002_v28  ;;  %v619_v59 = vld [vmem:[%s1223_s6] sm:$0x3] }
  0x15   : > { %579 = vmatpush1.bf16.msra.mxu1 %v977_v10  ;;  %610 = vmatprep.mubr.bf16.mxu1 %v1027_v6  ;;  %v624_v61 = vrot.slane %v619_v59, %v623_v58  ;;  %v628_v63 = vrot.slane %v619_v59, %v627_v60 }
  0x16   : > { %580 = vmatprep.subr.bf16.mxu1 %v982_v13  ;;  %936 = vmatprep.subr.bf16.mxu0 %v1003_v29 }
  0x18   : > { %937 = vmatpush3.bf16.msra.mxu0 %v1004_v30 }
  0x19   : > { %581 = vmatpush1.bf16.msra.mxu1 %v980_v14  ;;  %938 = vmatprep.subr.bf16.mxu0 %v1005_v31  ;;  %v912_v14 = vld [vmem:[%s1225_s8] ss:$0 sm:$0xff] }
  0x1a   : > { %582 = vmatprep.subr.bf16.mxu1 %v985_v15 }
  0x1c   : > { %939 = vmatpush3.bf16.msra.mxu0 %v1006_v32 }
  0x1d   : > { %583 = vmatpush1.bf16.msra.mxu1 %v983_v16  ;;  %940 = vmatprep.subr.bf16.mxu0 %v1007_v33 }
  0x1e   : > { %584 = vmatprep.subr.bf16.mxu1 %v988_v17 }
  0x20   : > { %941 = vmatpush3.bf16.msra.mxu0 %v1008_v34 }
  0x21   : > { %585 = vmatpush1.bf16.msra.mxu1 %v986_v18  ;;  %942 = vmatprep.subr.bf16.mxu0 %v1009_v35 }
  0x22   : > { %586 = vmatprep.subr.bf16.mxu1 %v991_v19 }
  0x24   : > { %943 = vmatpush3.bf16.msra.mxu0 %v1010_v36 }
  0x25   : > { %587 = vmatpush1.bf16.msra.mxu1 %v989_v20  ;;  %944 = vmatprep.subr.bf16.mxu0 %v1011_v50 }
  0x26   : > { %588 = vmatprep.subr.bf16.mxu1 %v994_v21 }
  0x28   : > { %945 = vmatpush3.bf16.msra.mxu0 %v1012_v51 }
  0x29   : > { %589 = vmatpush1.bf16.msra.mxu1 %v992_v22  ;;  %946 = vmatprep.subr.bf16.mxu0 %v1013_v52 }
  0x2a   : > { %590 = vmatprep.subr.bf16.mxu1 %v997_v23 }
  0x2c   : > { %947 = vmatpush3.bf16.msra.mxu0 %v1014_v53 }
  0x2d   : > { %591 = vmatpush1.bf16.msra.mxu1 %v995_v24  ;;  %948 = vmatprep.subr.bf16.mxu0 %v1015_v54 }
  0x2e   : > { %592 = vmatprep.subr.bf16.mxu1 %v1000_v25 }
  0x30   : > { %949 = vmatpush3.bf16.msra.mxu0 %v1016_v55 }
  0x31   : > { %593 = vmatpush1.bf16.msra.mxu1 %v998_v26 }
  0xe6   : > { %v409_v38 = vpop.f32.mrb[0].mxu0 }
  0xe7   : > { %v491_v39 = vpop.f32.mrb[0].mxu1  ;;  %v410_v40 = vadd.f32 %v889_v37, %v409_v38  ;;  %v962_v41 = vpop.f32.mrb[1].mxu0 }
  0xe8   : > { %v493_v42 = vpop.f32.mrb[1].mxu1  ;;  %v412_v43 = vpop.f32.mrb[2].mxu0 }
  0xe9   : > { %v495_v44 = vpop.f32.mrb[2].mxu1  ;;  %v415_v45 = vmul.f32 0.01, %v410_v40  ;;  %v963_v46 = vpop.f32.mrb[3].mxu0 }
  0xea   : > { %v496_v47 = vpop.f32.mrb[3].mxu1 }
  0xeb   : > { %v416_v48 = vmax.f32 %v410_v40, %v415_v45 }
  0xed   : > { %v417_v49 = vpack.c.bf16 %v416_v48, %v416_v48 }
  0xef   : > { %611 = vmatmul.mubr.bf16.vlgmr.msra.gmra.mrb[4].mxu1 %v417_v49 }
 0x1c2   : > { %v612_v62 = vpop.f32.mrb[4].mxu1 }
 0x1c3   : > { %v613_v0 = vadd.f32 %v612_v62, %v491_v39  ;;  %v614_v1 = vpop.f32.mrb[5].mxu1 }
 0x1c4   : > { %v615_v2 = vadd.f32 %v614_v1, %v493_v42  ;;  %v616_v3 = vpop.f32.mrb[6].mxu1 }
 0x1c5   : > { %v631_v4 = vadd.f32 %v624_v61, %v613_v0  ;;  %v617_v5 = vpop.f32.mrb[7].mxu1 }
 0x1c6   : > { %v632_v6 = vadd.f32 %v628_v63, %v615_v2 }
 0x1c7   : > { %v633_v7 = vmul.f32 0.01, %v631_v4 }
 0x1c8   : > { %v634_v8 = vmul.f32 0.01, %v632_v6 }
 0x1c9   : > { %v635_v9 = vmax.f32 %v631_v4, %v633_v7 }
 0x1ca   : > { %v636_v10 = vmax.f32 %v632_v6, %v634_v8 }
 0x1cb   : > { %v637_v12 = vpack.c.bf16 %v635_v9, %v635_v9 }
 0x1cc   : > { %v638_v11 = vpack.c.bf16 %v636_v10, %v636_v10 }
 0x1ce   : > { %806 = vmatprep.mubr.bf16.mxu0 %v638_v11 }
 0x1cf   : > { %807 = vmatmul.mubr.bf16.vlgmr.msra.gmra.mrb[4].mxu0 %v637_v12 }
 0x2a2   : > { %v950_v13 = vpop.f32.mrb[4].mxu0 }
 0x2a3   : > { %v951_v15 = vpop.f32.mrb[5].mxu0 }
 0x2a4   : > { %v952_v16 = vadd.f32 %v951_v15, %v950_v13  ;;  %v953_v17 = vpop.f32.mrb[6].mxu0 }
 0x2a5   : > { %v954_v18 = vpop.f32.mrb[7].mxu0 }
 0x2a6   : > { %v809_v19 = vadd.f32 %v952_v16, %v912_v14 }
 0x2a8   : > { %815 = vst.msk [vmem:[%s344_s20] sm:$0xff] %vm814_vm4, %v809_v19 }
 0x2a9 PF: > { %s19_s30 = sadd.s32 1, %s1023_s30  }
 0x2aa   : > { %p16_p4 = scmp.ge.s32.totalorder %s19_s30, 4  }
 0x2ac   :  { %18 = sbr.rel (!%p16_p4) target bundleno = 1 (0x1), region = 89 }

</bundles_post_ra>
